<compile_context>
chip_gen: v7x
topology: tpu7x:2x2x1
jax: 0.10.0
libtpu: 0.0.40
codegen_flags: <defaults>
</compile_context>

<pallas_src>
import jax
import jax.numpy as jnp
from jax.experimental import pallas as pl
from jax.experimental.pallas import tpu as pltpu


def _round_up(x, m):
    return ((x + m - 1) // m) * m


def _joint_emb_kernel(idx_ref, table_ref, out_ref):
    """idx_ref:   VMEM (tok_block, num_tables) int32, vocab offsets pre-added.
    table_ref: VMEM (V_pad, E_total) block-diagonal combined embedding table.
    out_ref:   VMEM (tok_block, E_total)."""
    tok_block = out_ref.shape[0]
    v_pad = table_ref.shape[0]
    num_tables = idx_ref.shape[1]

    iota = jax.lax.broadcasted_iota(jnp.int32, (tok_block, v_pad), 1)

    # Combined one-hot: per-table hits land in disjoint row ranges of the
    # block-diagonal table, so OR-ing the per-column compares is exact.
    # Columns are sliced straight off the ref (static slices, no full load of
    # the lane-padded index block).
    hit = idx_ref[:, 0:1] == iota
    for k in range(1, num_tables):
        hit = jnp.logical_or(hit, idx_ref[:, k : k + 1] == iota)

    # Single MXU pass per block: (tok_block, V_pad) @ (V_pad, E_total).
    rows = jnp.dot(
        hit.astype(table_ref.dtype),
        table_ref[...],
        preferred_element_type=jnp.float32,
    )
    # Single lane-dense full-width store (no in-kernel concatenate).
    out_ref[...] = rows.astype(out_ref.dtype)


def _pick_tok_block(N, max_block=512):
    """Choose (tok_block, N_pad).

    Prefer an exact divisor of N so N_pad == N (no post-kernel slice copy of
    the whole result) and, when N allows, >= 2 grid steps so v7x's two
    TensorCores both get work.  Fall back to pad+slice only when no reasonably
    large divisor exists (exact tiling would otherwise explode the grid and
    per-step overhead).
    """
    max_block = max(8, (int(max_block) // 8) * 8)
    if N > 0 and N % 8 == 0:
        divs = [d for d in range(8, min(max_block, N) + 1, 8) if N % d == 0]
        pref = [d for d in divs if N // d >= 2] or divs
        if pref:
            best = max(pref)
            # Accept exact tiling unless it forces tiny blocks on a big N
            # (<= 64 grid steps keeps per-step overhead negligible).
            if best >= 256 or best * 64 >= N:
                return best, N
    tb = max(8, min(max_block, pl.cdiv(max(N, 1), 8) * 8))
    n_pad = pl.cdiv(max(N, 1), tb) * tb
    return tb, n_pad


def joint_embeddings(inputs, tables, *, max_tok_block=512, out_dtype=None):
    """inputs: list of (B, S) int arrays; tables: list of (vocab_k, emb_k).

    Returns (B, S, sum(emb_k)) == torch.cat([emb_k(x_k) for ...], dim=2).

    out_dtype defaults to the table dtype (f32, matching torch).  Pass
    jnp.bfloat16 to halve the HBM store traffic if downstream tolerates it
    (this kernel is output-store-bound).
    """
    assert len(inputs) == len(tables) and len(tables) > 0
    num_tables = len(tables)
    B, S = inputs[0].shape
    N = B * S

    table_dtype = tables[0].dtype
    for t in tables:
        assert t.dtype == table_dtype, "all embedding tables must share a dtype"
    if out_dtype is None:
        out_dtype = table_dtype

    vocab_sizes = [int(t.shape[0]) for t in tables]
    emb_sizes = [int(t.shape[1]) for t in tables]
    E_total = sum(emb_sizes)
    V_total = sum(vocab_sizes)
    V_pad = _round_up(max(V_total, 8), 8)  # clean sublane layout for the table

    # Block-diagonal combined table: table k occupies rows
    # [voff_k, voff_k + vocab_k) and cols [coff_k, coff_k + emb_k).
    combined = jnp.zeros((V_pad, E_total), table_dtype)
    voffs = []
    voff = coff = 0
    for t, v, e in zip(tables, vocab_sizes, emb_sizes):
        combined = combined.at[voff : voff + v, coff : coff + e].set(t)
        voffs.append(voff)
        voff += v
        coff += e

    tok_block, n_pad = _pick_tok_block(N, max_tok_block)
    grid = (n_pad // tok_block,)

    # Indices as one (N_pad, num_tables) int32 slab.  Clamp into range (torch
    # would raise on OOB) and pre-add the per-table vocab offsets so the kernel
    # only does compares.  Zero-padded rows (only when N % 8 != 0) hit combined
    # row 0 and are sliced off below.
    cols = [
        jnp.clip(jnp.reshape(x, (N,)).astype(jnp.int32), 0, v - 1) + off
        for x, v, off in zip(inputs, vocab_sizes, voffs)
    ]
    idx = jnp.stack(cols, axis=1)
    if n_pad != N:
        idx = jnp.pad(idx, ((0, n_pad - N), (0, 0)))

    # Explicit VMEM budget: pipeline double-buffers every block; add modest
    # headroom for Mosaic internal scratch and stay well below v7x's 64 MiB.
    tab_item = jnp.dtype(table_dtype).itemsize
    out_item = jnp.dtype(out_dtype).itemsize
    table_bytes = V_pad * _round_up(E_total, 128) * tab_item
    idx_bytes = tok_block * _round_up(num_tables, 128) * 4
    out_bytes = tok_block * _round_up(E_total, 128) * out_item
    onehot_bytes = tok_block * _round_up(V_pad, 128) * 4
    footprint = 2 * (table_bytes + idx_bytes + out_bytes) + onehot_bytes
    vmem_limit = int(min(footprint + (16 << 20), 48 << 20))

    out = pl.pallas_call(
        _joint_emb_kernel,
        out_shape=jax.ShapeDtypeStruct((n_pad, E_total), out_dtype),
        grid=grid,
        in_specs=[
            # Index block walks the token axis.
            pl.BlockSpec((tok_block, num_tables), lambda i: (i, 0)),
            # Combined table fully VMEM-resident (constant block index).
            pl.BlockSpec((V_pad, E_total), lambda i: (0, 0)),
        ],
        out_specs=pl.BlockSpec((tok_block, E_total), lambda i: (i, 0)),
        compiler_params=pltpu.CompilerParams(
            # Disjoint output blocks, read-only table -> shardable across
            # v7x's two TensorCores.
            dimension_semantics=("parallel",),
            vmem_limit_bytes=vmem_limit,
        ),
    )(idx, combined)

    if n_pad != N:
        out = out[:N]
    return out.reshape(B, S, E_total)


if __name__ == "__main__":
    # Module config (synthetic, deterministic init).
    vocab_sizes = (13, 7, 23)
    emb_sizes = (32, 64, 32)  # emb_dim == 128 (lane-dense output tile)
    batch, seq = 2, 8

    key = jax.random.PRNGKey(0)
    keys = jax.random.split(key, 2 * len(vocab_sizes))

    # Embedding weights ~ N(0, 1), like torch.nn.Embedding's default init.
    tables = [
        jax.random.normal(keys[2 * k], (v, e), dtype=jnp.float32)
        for k, (v, e) in enumerate(zip(vocab_sizes, emb_sizes))
    ]
    # Integer inputs, one per embedding, shape (B, S).
    inputs = [
        jax.random.randint(keys[2 * k + 1], (batch, seq), 0, v, dtype=jnp.int32)
        for k, v in enumerate(vocab_sizes)
    ]

    out = joint_embeddings(inputs, tables)
    out = jax.block_until_ready(out)

    # Pure-JAX reference: gather + concat along dim=2.
    ref = jnp.concatenate(
        [jnp.take(tab, x, axis=0) for tab, x in zip(tables, inputs)], axis=2
    )
    assert out.shape == (batch, seq, sum(emb_sizes)), out.shape
    assert jnp.allclose(out, ref, atol=1e-5), "Pallas output mismatch vs reference"

    print("KERNEL_OK")
</pallas_src>

<mosaic_0001>
module attributes {stable_mosaic.version = 11 : i64} {
  func.func @_joint_emb_kernel(%arg0: i32, %arg1: memref<8x3xi32, #tpu.memory_space<vmem>>, %arg2: memref<48x128xf32, #tpu.memory_space<vmem>>, %arg3: memref<8x128xf32, #tpu.memory_space<vmem>>) attributes {dimension_semantics = [#tpu.dimension_semantics<parallel>], iteration_bounds = array<i64: 2>, scalar_prefetch = 0 : i64, scratch_operands = 0 : i64, tpu.core_type = #tpu.core_type<tc>, window_params = [{transform_indices = @transform_0, window_bounds = array<i64: 8, 3>}, {pipeline_mode = #tpu.pipeline_mode<synchronous>, transform_indices = @transform_1, window_bounds = array<i64: 48, 128>}, {transform_indices = @transform_2, window_bounds = array<i64: 8, 128>}]} {
    %0 = tpu.iota {dimensions = array<i32: 1>} : vector<8x48xi32>
    %c0 = arith.constant 0 : index
    %c0_0 = arith.constant 0 : index
    %1 = vector.load %arg1[%c0, %c0_0] : memref<8x3xi32, #tpu.memory_space<vmem>>, vector<8x1xi32>
    %2 = vector.broadcast %1 : vector<8x1xi32> to vector<8x48xi32>
    %3 = arith.cmpi eq, %2, %0 : vector<8x48xi32>
    %c0_1 = arith.constant 0 : index
    %c1 = arith.constant 1 : index
    %4 = vector.load %arg1[%c0_1, %c1] : memref<8x3xi32, #tpu.memory_space<vmem>>, vector<8x1xi32>
    %5 = vector.broadcast %4 : vector<8x1xi32> to vector<8x48xi32>
    %6 = arith.cmpi eq, %5, %0 : vector<8x48xi32>
    %7 = arith.ori %3, %6 : vector<8x48xi1>
    %c0_2 = arith.constant 0 : index
    %c2 = arith.constant 2 : index
    %8 = vector.load %arg1[%c0_2, %c2] : memref<8x3xi32, #tpu.memory_space<vmem>>, vector<8x1xi32>
    %9 = vector.broadcast %8 : vector<8x1xi32> to vector<8x48xi32>
    %10 = arith.cmpi eq, %9, %0 : vector<8x48xi32>
    %11 = arith.ori %7, %10 : vector<8x48xi1>
    %12 = arith.extui %11 : vector<8x48xi1> to vector<8x48xi32>
    %13 = arith.sitofp %12 : vector<8x48xi32> to vector<8x48xf32>
    %c0_3 = arith.constant 0 : index
    %c0_4 = arith.constant 0 : index
    %14 = vector.load %arg2[%c0_3, %c0_4] : memref<48x128xf32, #tpu.memory_space<vmem>>, vector<48x128xf32>
    %cst = arith.constant dense<0.000000e+00> : vector<8x128xf32>
    %15 = tpu.matmul %13, %14, %cst {dimension_numbers = #tpu.dot_dimension_numbers<[1], [0], [0], [1], [0, 0, 1, 1], [], []>} : vector<8x48xf32>, vector<48x128xf32>, vector<8x128xf32> -> vector<8x128xf32>
    %c0_5 = arith.constant 0 : index
    %c0_6 = arith.constant 0 : index
    %16 = vector.load %arg3[%c0_5, %c0_6] : memref<8x128xf32, #tpu.memory_space<vmem>>, vector<8x128xf32>
    tpu.vector_store %arg3[%c0_5, %c0_6], %15 {strides = array<i32>} : memref<8x128xf32, #tpu.memory_space<vmem>>, vector<8x128xf32>,
    return
  }
  func.func @transform_0(%arg0: i32) -> (i32, i32) {
    %c0_i32 = arith.constant 0 : i32
    %c0_i32_0 = arith.constant 0 : i32
    return %arg0, %c0_i32 : i32, i32
  }
  func.func @transform_1(%arg0: i32) -> (i32, i32) {
    %c0_i32 = arith.constant 0 : i32
    %c0_i32_0 = arith.constant 0 : i32
    %c0_i32_1 = arith.constant 0 : i32
    return %c0_i32, %c0_i32_0 : i32, i32
  }
  func.func @transform_2(%arg0: i32) -> (i32, i32) {
    %c0_i32 = arith.constant 0 : i32
    %c0_i32_0 = arith.constant 0 : i32
    return %arg0, %c0_i32 : i32, i32
  }
}

</mosaic_0001>

<bundles_post_ra>
// kernel: tpu_custom_call.1
= control target key start
LH: loop header
LB: loop body
LE: loop exit
PB: predicated region body
PF: predicated region fallthrough
CT: control target
= control target key end

     0   :  { %7 = vsyncpa [#allocation3], 0  ;;  %s702_s0 = inlined_call_operand.vmem [shape: s32[16,3], index: 0, kind: input, shape index: {}]   ;;  %s703_s1 = inlined_call_operand.hbm [shape: f32[48,128], index: 1, kind: input, shape index: {}]   ;;  %s704_s2 = inlined_call_operand.hbm [shape: f32[16,128], index: 2, kind: output, shape index: {}]  }
   0x1   :  { %8 = vsyncpa [#allocation4], 0 }
   0x2   :  { %10 = vsyncpa [#allocation4 + $0x1], 0  ;;  %s567_s9 = smov 0   ;;  %s569_s10 = smov 0  }
   0x3   :  { %s571_s11 = smov 0   ;;  %s573_s12 = smov 0  }
   0x4 LB: > { %s588_s13 = sadd.s32 4294967295, %s540_s12   ;;  %s339_s14 = sadd.s32 4294967294, %s540_s12   ;;  %s540_s12 = sphi %s573_s12, %s720_s12   ;;  %s536_s11 = sphi %s571_s11, %s719_s11   ;;  %s532_s10 = sphi %s569_s10, %s718_s10   ;;  %s528_s9 = sphi %s567_s9, %s717_s9  }
   0x5   : > { %s592_s15 = sadd.s32 1, %s540_s12   ;;  %s70_s16 = sadd.s32 1, %s536_s11 }
   0x6   : > { %s67_s17 = ssub.s32 %s540_s12, %s592_s15  ;;  %p80_p0 = scmp.ne.s32.totalorder %s536_s11, %s532_s10 }
   0x7   : > { %p68_p1 = scmp.eq.s32.totalorder %s67_s17, 0  ;;  %p81_p2 = scmp.eq.s32.totalorder %s588_s13, 1 }
   0x8   : > { %p86_p3 = scmp.ne.s32.totalorder %s532_s10, %s528_s9  ;;  %p87_p4 = scmp.eq.s32.totalorder %s339_s14, 1 }
   0x9   : > { %s603_s18 = scalar_select %p68_p1, %s536_s11, %s70_s16  }
   0xa   : > { %p605_p5 = por %p81_p2, %p80_p0  ;;  %p609_p6 = por %p87_p4, %p86_p3 }
   0xb   : > { %p340_p7 = scmp.ge.s32.totalorder %s540_s12, 1  ;;  %p94_p8 = scmp.lt.s32.totalorder %s540_s12, 3 }
   0xc   : > { %s708_s19 = scalar_select %p605_p5, 1, 0 }
   0xd   : > { %s709_s20 = scalar_select %p609_p6, 1, 0 }
   0xe   : > { %p705_p9 = scmp.eq.s32.totalorder %s588_s13, 0  ;;  %p616_p10 = pnand %p340_p7, %p94_p8 }
   0xf   : > { %s542_s22 = smov [#allocation2]   ;;  %s446_s27 = scalar_lea.hbm %s703_s1, 768 }
  0x10   : > { %s710_s21 = scalar_select %p616_p10, 1, 0 }
  0x11   : > { %s106_s23 = sshll.u32 %s542_s22, 4  ;;  %p390_p11 = pneg %p616_p10  ;;  %s107_s23 = int_to_ptr.vmem [resolvable:$true] %s106_s23 }
  0x12   : > { %p447_p13 = scmp.ne.s32.totalorder %s703_s1, %s446_s27  ;;  %p453_p3 = scmp.lt.u32.totalorder %s446_s27, %s703_s1 }
  0x13   : > { %p624_p12 = pnand %p705_p9, %p390_p11 }
  0x15   : > { %p448_p0 = pneg %p624_p12 }
  0x17   : > { %p449_p1 = pnand %p448_p0, %p447_p13 }
  0x19   : > { %p450_p2 = pneg %p449_p1 }
  0x1b   : > { %p455_p4 = pnand %p453_p3, %p450_p2 }
  0x1d   : > { %458 = shalt.err (!%p455_p4)
}
  0x1e   : > { %s459_s4 = scalar_lea.vmem %s107_s23, 768  ;;  %p467_p9 = scmp.lt.s32.totalorder %s107_s23, %s107_s23 }
  0x1f   : > { %p460_p7 = scmp.ne.s32.totalorder %s107_s23, %s459_s4  ;;  %p468_p6 = scmp.lt.s32.totalorder %s459_s4, %s459_s4 }
  0x21   : > { %p462_p8 = pnand %p460_p7, %p448_p0  ;;  %p469_p5 = por %p468_p6, %p467_p9 }
  0x23   : > { %p463_p11 = pneg %p462_p8 }
  0x25   : > { %p470_p10 = pnand %p469_p5, %p463_p11 }
  0x27   : > { %473 = shalt.err (!%p470_p10)
}
  0x28   : > { %s543_s5 = smov 128   ;;  %s544_s6 = smov 8  }
  0x29   : > { %393 = dma.hbm_to_vmem [thread:$0]  (!%p624_p12), %s703_s1, 768, %s107_s23, [#allocation3], %s543_s5, %s543_s5, %s544_s6  }
  0x2a   : > { %p712_p13 = scmp.ne.s32.totalorder %s710_s21, 0 }
  0x2b   : > { %p713_p1 = scmp.eq.s32.totalorder (!%p712_p13), %s588_s13, 0 }
  0x2c   : > { %129 = sbr.rel (%p712_p13) target bundleno = 422 (0x1a6), region = 28 }
  0x33   : > { %519 = dma.done.wait (%p713_p1), [#allocation3], 768   ;;  %p714_p0 = pmov %p713_p1 }
  0x34   : > { %p150_p5 = scmp.lt.s32.totalorder %s588_s13, 1  ;;  %v545_v0 = vmov 0   ;;  %v546_v1 = vmov 2   ;;  %v547_v2 = vmov 0.0|0.0   ;;  %v173_v4 = vld [vmem:[#allocation2] sm:$0xff]  ;;  %v174_v5 = vld [vmem:[#allocation2 + $0x8] sm:$0xff]  ;;  %v154_v15 = vlaneseq }
  0x35   : > { %521 = vsyncadd (%p714_p0), [#allocation3], 4294966528  ;;  %442 = vset.pattern.permute.xlu0 %v545_v0  ;;  %444 = vset.pattern.permute.xlu1 %v546_v1  ;;  %v376_v6 = vpack.c.bf16 %v174_v5, %v173_v4  ;;  %v175_v7 = vld [vmem:[#allocation2 + $0x10] sm:$0xff]  ;;  %v176_v8 = vld [vmem:[#allocation2 + $0x18] sm:$0xff]  ;;  %v548_v12 = vmov 1   ;;  %vm549_vm0 = vmmov 0  }
  0x36   : > { %s151_s14 = scalar_select %p150_p5, %s588_s13, 1  ;;  %375 = vmatprep.subr.bf16.mxu0 %v547_v2  ;;  %v379_v9 = vpack.c.bf16 %v176_v8, %v175_v7  ;;  %v177_v10 = vld [vmem:[#allocation2 + $0x20] sm:$0xff]  ;;  %v178_v11 = vld [vmem:[#allocation2 + $0x28] sm:$0xff]  ;;  %v550_v14 = vmov 0.0   ;;  %v155_v17 = vand.u32 127, %v154_v15  ;;  %vm179_vm5 = vcmask 392192  }
  0x37   : > { %377 = vmatpush3.bf16.msra.mxu0 %v376_v6  ;;  %v382_v13 = vpack.c.bf16 %v178_v11, %v177_v10  ;;  %372 = vmatprep.mubr.msk.f32.mxu0 %vm549_vm0, %v550_v14  ;;  %s147_s23 = sand.u32 1, %s532_s10   ;;  %s350_s27 = sshll.u32 %s588_s13, 7 }
  0x38   : > { %s346_s16 = sshll.u32 %s151_s14, 3  ;;  %378 = vmatprep.subr.bf16.mxu0 %v547_v2  ;;  %s345_s24 = sshll.u32 %s147_s23, 3 }
  0x39   : > { %s153_s22 = scalar_lea.vmem %s702_s0, %s346_s16  ;;  %s149_s25 = scalar_lea.vmem [#allocation5], %s345_s24 }
  0x3a   : > { %v156_v3 = vld [vmem:[%s153_s22] sm:$0xff]  ;;  %s268_s26 = sshll.u32 %s149_s25, 4  ;;  %s662_s30 = scalar_lea.hbm %s704_s2, %s350_s27  ;;  %s657_s26 = int_to_ptr.vmem [resolvable:$true] %s268_s26 }
  0x3b   : > { %158 = vperm.xlu0 %442, %v156_v3   ;;  %167 = vperm.xlu1 %444, %v156_v3   ;;  %s255_s3 = scalar_lea.sflag [#allocation4], %s147_s23  ;;  %s474_s4 = scalar_lea.vmem %s657_s26, 128 }
  0x3c   : > { %380 = vmatpush3.bf16.msra.mxu0 %v379_v9  ;;  %p475_p6 = scmp.ne.s32.totalorder %s657_s26, %s474_s4  ;;  %p715_p9 = scmp.ne.s32.totalorder %s708_s19, 0 }
  0x3d   : > { %381 = vmatprep.subr.bf16.mxu0 %v547_v2  ;;  %s551_s13 = smov [#allocation5]  }
  0x3e   : > { %p476_p10 = pnand %p475_p6, %p715_p9  ;;  %s478_s5 = sshll.u32 %s551_s13, 4  ;;  %s479_s5 = int_to_ptr.vmem [resolvable:$false] %s478_s5 }
  0x3f   : > { %443 = vset.pattern.permute.xlu0 %v548_v12  ;;  %s480_s6 = scalar_lea.vmem %s479_s5, 256  ;;  %p481_p2 = scmp.lt.s32.totalorder %s657_s26, %s479_s5 }
  0x40   : > { %162 = vperm.xlu0 %443, %v156_v3   ;;  %383 = vmatpush3.bf16.msra.mxu0 %v382_v13  ;;  %p477_p12 = pneg %p476_p10  ;;  %p482_p3 = scmp.lt.s32.totalorder %s480_s6, %s474_s4 }
  0x42   : > { %p483_p4 = por %p482_p3, %p481_p2 }
  0x44   : > { %445 = vset.pattern.permute.xlu0 %v546_v1  ;;  %p484_p7 = pnand %p483_p4, %p477_p12 }
  0xba   : > { %v159_v16 = vpop.permute.xlu0 %158  ;;  %v168_v18 = vpop.permute.xlu1 %167 }
  0xbb   : > { %vm169_vm1 = vcmp.eq.s32.totalorder %v168_v18, %v155_v17  ;;  %vm160_vm2 = vcmp.eq.s32.totalorder %v159_v16, %v155_v17 }
  0xbf   : > { %v163_v19 = vpop.permute.xlu0 %162 }
  0xc0   : > { %vm164_vm3 = vcmp.eq.s32.totalorder %v163_v19, %v155_v17 }
  0xc1   : > { %vm165_vm4 = vmor %vm160_vm2, %vm164_vm3 }
  0xc2   : > { %vm170_vm6 = vmor %vm165_vm4, %vm169_vm1 }
  0xc3   : > { %v347_v20 = vsel %vm170_vm6, 1.0, %v550_v14 }
  0xc4   : > { %373 = vmatmul.mubr.msk.f32.vlgmr.msra.gmra.mrb[0].mxu0 %vm179_vm5, %v347_v20 }
 0x197   : > { %v249_v21 = vpop.f32.mrb[0].mxu0 }
 0x198   : > { %253 = vst [vmem:[%s149_s25] sm:$0xff] %v249_v21  ;;  %v374_v22 = vpop.f32.mrb[1].mxu0 }
 0x199   : > { %487 = shalt.err (!%p484_p7)
}
 0x19a   : > { %s488_s7 = scalar_lea.hbm %s662_s30, 128  ;;  %s492_s16 = scalar_lea.hbm %s704_s2, 256 }
 0x19b   : > { %p489_p8 = scmp.ne.s32.totalorder %s662_s30, %s488_s7  ;;  %p493_p1 = scmp.lt.u32.totalorder %s662_s30, %s704_s2 }
 0x19c   : > { %p494_p0 = scmp.lt.u32.totalorder %s492_s16, %s488_s7  ;;  %p496_p6 = scmp.lt.u32.totalorder %s488_s7, %s662_s30 }
 0x19d   : > { %p490_p11 = pnand %p489_p8, %p715_p9 }
 0x19e   : > { %p495_p5 = por %p494_p0, %p493_p1 }
 0x19f   : > { %p491_p13 = pneg %p490_p11 }
 0x1a0   : > { %p497_p10 = por %p496_p6, %p495_p5 }
 0x1a2   : > { %p498_p12 = pnand %p497_p10, %p491_p13 }
 0x1a4   : > { %501 = shalt.err (!%p498_p12)
}
 0x1a5   : > { %388 = dma.vmem_to_hbm [thread:$0]  (%p715_p9), %s657_s26, 128, %s662_s30, %s255_s3  }
 0x1a6 PF: > { %p400_p2 = scmp.ge.s32.totalorder %s540_s12, 2  ;;  %s280_s22 = sand.u32 1, %s528_s9  }
 0x1a7   : > { %p716_p3 = scmp.ne.s32.totalorder %s709_s20, 0  ;;  %s281_s23 = scalar_lea.sflag [#allocation4], %s280_s22 }
 0x1a9   : > { %p395_p4 = pnand %p400_p2, %p716_p3 }
 0x1ab   : > { %523 = dma.done.wait (!%p395_p4), %s281_s23, 128  }
 0x1ac   : > { %525 = vsyncadd (!%p395_p4), %s281_s23, 4294967168  ;;  %p13_p7 = scmp.ge.s32.totalorder %s592_s15, 4   ;;  %s717_s9 = smov %s532_s10 }
 0x1ad   : > { %s718_s10 = smov %s536_s11  ;;  %s719_s11 = smov %s603_s18 }
 0x1ae   : > { %s720_s12 = smov %s592_s15  ;;  %15 = sbr.rel (!%p13_p7) target bundleno = 4 (0x4), region = 68 }
 0x1b5   :  { %286 = vsyncpa [#allocation3], 1 }
 0x1b6   :  { %288 = vsyncpa [#allocation3 + $0x1], 1 }
 0x1b7   :  { %289 = vsyncpa [#allocation4], 1 }
 0x1b8   :  { %291 = vsyncpa [#allocation4 + $0x1], 1 }

</bundles_post_ra>
